<compile_context>
chip_gen: v7x
topology: tpu7x:2x2x1
jax: 0.10.0
libtpu: 0.0.40
codegen_flags: <defaults>
</compile_context>

<pallas_src>
import math

import jax
import jax.numpy as jnp
from jax.experimental import pallas as pl
from jax.experimental.pallas import tpu as pltpu


def _round_up(v, m):
    return ((v + m - 1) // m) * m


def _bce_dice_partial_kernel(x_ref, t_ref, out_ref):
    # x_ref, t_ref: (1, TR, 128) logits / targets for sample b, row-chunk k
    # out_ref:      (1, 4, 8, 128) lane-dense partial sums, resident across k
    #               rows: [bce, p*t, p, t]
    k = pl.program_id(1)

    @pl.when(k == 0)
    def _():
        out_ref[...] = jnp.zeros_like(out_ref)

    x = x_ref[0].astype(jnp.float32)          # (TR, 128)
    t = t_ref[0].astype(jnp.float32)          # (TR, 128)

    # One transcendental per element: z = exp(-|x|), reused for BCE and sigmoid.
    z = jnp.exp(-jnp.abs(x))
    bce = jnp.maximum(x, 0.0) - x * t + jnp.log1p(z)      # stable BCE-with-logits
    inv = 1.0 / (1.0 + z)                                  # exact divide (tolerance)
    p = jnp.where(x >= 0.0, inv, z * inv)                  # sigmoid(x), no 2nd exp

    r = x.shape[0]

    def fold(v):
        # (TR, 128) -> (8, 128): sum groups of 8 rows; pure vreg-wise VPU adds.
        return jnp.sum(v.reshape(r // 8, 8, 128), axis=0)

    out_ref[0, 0] += fold(bce)
    out_ref[0, 1] += fold(p * t)
    out_ref[0, 2] += fold(p)
    out_ref[0, 3] += fold(t)


def bce_dice_loss(inputs, targets, *, max_block_rows=2048):
    """BCEDiceLoss forward. inputs (logits) / targets: NCHW, same shape."""
    assert inputs.shape == targets.shape
    B = inputs.shape[0]
    N = math.prod(inputs.shape[1:])

    # Lane-dense layout: each sample becomes (Rp, 128) rows.
    R = -(-N // 128)                              # rows of 128 lanes needed
    K = -(-R // max_block_rows)                   # grid steps along the row axis
    TR = _round_up(-(-R // K), 8)                 # rows per block (multiple of 8)
    Rp = TR * K
    Np = Rp * 128

    x = inputs.reshape(B, N)
    t = targets.reshape(B, N)
    if Np != N:
        pad = Np - N
        # Pad logits with a large negative value: sigmoid(-100) ~ 0,
        # log1p(exp(-100)) ~ 0, target 0 -> padding contributes ~0 to every sum.
        x = jnp.pad(x, ((0, 0), (0, pad)), constant_values=-100.0)
        t = jnp.pad(t, ((0, 0), (0, pad)), constant_values=0)
    x = x.reshape(B, Rp, 128)
    t = t.reshape(B, Rp, 128)

    partials = pl.pallas_call(
        _bce_dice_partial_kernel,
        out_shape=jax.ShapeDtypeStruct((B, 4, 8, 128), jnp.float32),
        grid_spec=pltpu.PrefetchScalarGridSpec(
            num_scalar_prefetch=0,
            grid=(B, K),
            in_specs=[
                pl.BlockSpec((1, TR, 128), lambda b, k: (b, k, 0)),
                pl.BlockSpec((1, TR, 128), lambda b, k: (b, k, 0)),
            ],
            out_specs=pl.BlockSpec((1, 4, 8, 128), lambda b, k: (b, 0, 0, 0)),
        ),
        compiler_params=pltpu.CompilerParams(
            dimension_semantics=("parallel", "arbitrary")),
    )(x, t)

    # Tiny finalize in JAX: reduce the (8,128) lane partials, then combine.
    sums = jnp.sum(partials, axis=(2, 3))         # (B, 4)
    bce_sum = sums[:, 0]
    intersection = sums[:, 1]
    p_sum = sums[:, 2]
    t_sum = sums[:, 3]

    smooth = 1e-05
    bce_loss = jnp.sum(bce_sum) / (B * N)         # mean over all real elements
    dice_score = (2.0 * intersection + smooth) / (p_sum + t_sum + smooth)
    dice_loss = 1.0 - jnp.mean(dice_score)
    return bce_loss + dice_loss


def _reference(inputs, targets):
    # Pure-JAX reference mirroring the PyTorch forward.
    x = inputs.astype(jnp.float32)
    t = targets.astype(jnp.float32)
    bce = jnp.mean(jnp.maximum(x, 0.0) - x * t + jnp.log1p(jnp.exp(-jnp.abs(x))))
    p = jax.nn.sigmoid(x)
    smooth = 1e-05
    inter = jnp.sum(p * t, axis=(1, 2, 3))
    dice = (2.0 * inter + smooth) / (
        jnp.sum(p, axis=(1, 2, 3)) + jnp.sum(t, axis=(1, 2, 3)) + smooth)
    return bce + (1.0 - jnp.mean(dice))


if __name__ == "__main__":
    key = jax.random.PRNGKey(0)
    k1, k2 = jax.random.split(key)
    B, C, H, W = 2, 4, 16, 16
    logits = jax.random.normal(k1, (B, C, H, W), dtype=jnp.float32)
    targets = (jax.random.uniform(k2, (B, C, H, W)) > 0.5).astype(jnp.float32)

    loss = jax.block_until_ready(bce_dice_loss(logits, targets))
    ref = jax.block_until_ready(_reference(logits, targets))
    assert jnp.allclose(loss, ref, atol=1e-5, rtol=1e-5), (loss, ref)
    print("KERNEL_OK")
</pallas_src>

<mosaic_0001>
module attributes {stable_mosaic.version = 11 : i64} {
  func.func @_bce_dice_partial_kernel(%arg0: i32, %arg1: i32, %arg2: memref<1x8x128xf32, #tpu.memory_space<vmem>>, %arg3: memref<1x8x128xf32, #tpu.memory_space<vmem>>, %arg4: memref<1x4x8x128xf32, #tpu.memory_space<vmem>>) attributes {dimension_semantics = [#tpu.dimension_semantics<parallel>, #tpu.dimension_semantics<arbitrary>], iteration_bounds = array<i64: 2, 1>, scalar_prefetch = 0 : i64, scratch_operands = 0 : i64, tpu.core_type = #tpu.core_type<tc>, window_params = [{transform_indices = @transform_0, window_bounds = array<i64: 1, 8, 128>}, {transform_indices = @transform_1, window_bounds = array<i64: 1, 8, 128>}, {transform_indices = @transform_2, window_bounds = array<i64: 1, 4, 8, 128>}]} {
    %c0_i32 = arith.constant 0 : i32
    %0 = arith.cmpi eq, %arg1, %c0_i32 : i32
    %1 = arith.extui %0 : i1 to i32
    %c0_i32_0 = arith.constant 0 : i32
    %2 = arith.cmpi ne, %1, %c0_i32_0 : i32
    scf.if %2 {
      %cst_43 = arith.constant 0.000000e+00 : f32
      %58 = vector.broadcast %cst_43 : f32 to vector<1x4x8x128xf32>
      %c0_44 = arith.constant 0 : index
      %c0_45 = arith.constant 0 : index
      %c0_46 = arith.constant 0 : index
      %c0_47 = arith.constant 0 : index
      %59 = vector.load %arg4[%c0_44, %c0_45, %c0_46, %c0_47] : memref<1x4x8x128xf32, #tpu.memory_space<vmem>>, vector<1x4x8x128xf32>
      tpu.vector_store %arg4[%c0_44, %c0_45, %c0_46, %c0_47], %58 {strides = array<i32>} : memref<1x4x8x128xf32, #tpu.memory_space<vmem>>, vector<1x4x8x128xf32>,
    } else {
    }
    %c0 = arith.constant 0 : index
    %c0_1 = arith.constant 0 : index
    %c0_2 = arith.constant 0 : index
    %3 = vector.load %arg2[%c0, %c0_1, %c0_2] : memref<1x8x128xf32, #tpu.memory_space<vmem>>, vector<1x8x128xf32>
    %4 = vector.shape_cast %3 : vector<1x8x128xf32> to vector<8x128xf32>
    %c0_3 = arith.constant 0 : index
    %c0_4 = arith.constant 0 : index
    %c0_5 = arith.constant 0 : index
    %5 = vector.load %arg3[%c0_3, %c0_4, %c0_5] : memref<1x8x128xf32, #tpu.memory_space<vmem>>, vector<1x8x128xf32>
    %6 = vector.shape_cast %5 : vector<1x8x128xf32> to vector<8x128xf32>
    %7 = math.absf %4 : vector<8x128xf32>
    %cst = arith.constant 0.000000e+00 : f32
    %8 = vector.broadcast %cst : f32 to vector<8x128xf32>
    %9 = arith.subf %8, %7 : vector<8x128xf32>
    %10 = math.exp %9 : vector<8x128xf32>
    %cst_6 = arith.constant 0.000000e+00 : f32
    %11 = vector.broadcast %cst_6 : f32 to vector<8x128xf32>
    %12 = arith.maximumf %4, %11 : vector<8x128xf32>
    %13 = arith.mulf %4, %6 : vector<8x128xf32>
    %14 = arith.subf %12, %13 : vector<8x128xf32>
    %15 = math.log1p %10 : vector<8x128xf32>
    %16 = arith.addf %14, %15 : vector<8x128xf32>
    %cst_7 = arith.constant 1.000000e+00 : f32
    %17 = vector.broadcast %cst_7 : f32 to vector<8x128xf32>
    %18 = arith.addf %17, %10 : vector<8x128xf32>
    %cst_8 = arith.constant 1.000000e+00 : f32
    %19 = vector.broadcast %cst_8 : f32 to vector<8x128xf32>
    %20 = arith.divf %19, %18 : vector<8x128xf32>
    %cst_9 = arith.constant 0.000000e+00 : f32
    %21 = vector.broadcast %cst_9 : f32 to vector<8x128xf32>
    %22 = arith.cmpf oge, %4, %21 : vector<8x128xf32>
    %23 = arith.mulf %10, %20 : vector<8x128xf32>
    %24 = arith.select %22, %20, %23 : vector<8x128xi1>, vector<8x128xf32>
    %c0_10 = arith.constant 0 : index
    %c0_11 = arith.constant 0 : index
    %c0_12 = arith.constant 0 : index
    %c0_13 = arith.constant 0 : index
    %25 = vector.load %arg4[%c0_10, %c0_11, %c0_12, %c0_13] : memref<1x4x8x128xf32, #tpu.memory_space<vmem>>, vector<1x1x8x128xf32>
    %26 = vector.shape_cast %25 : vector<1x1x8x128xf32> to vector<8x128xf32>
    %27 = vector.shape_cast %16 : vector<8x128xf32> to vector<1x8x128xf32>
    %cst_14 = arith.constant dense<0.000000e+00> : vector<8x128xf32>
    %28 = vector.multi_reduction <add>, %27, %cst_14 [0] : vector<1x8x128xf32> to vector<8x128xf32>
    %29 = arith.addf %26, %28 : vector<8x128xf32>
    %c0_15 = arith.constant 0 : index
    %c0_16 = arith.constant 0 : index
    %c0_17 = arith.constant 0 : index
    %c0_18 = arith.constant 0 : index
    %30 = vector.load %arg4[%c0_15, %c0_16, %c0_17, %c0_18] : memref<1x4x8x128xf32, #tpu.memory_space<vmem>>, vector<1x1x8x128xf32>
    %31 = vector.shape_cast %30 : vector<1x1x8x128xf32> to vector<8x128xf32>
    %32 = vector.shape_cast %29 : vector<8x128xf32> to vector<1x1x8x128xf32>
    tpu.vector_store %arg4[%c0_15, %c0_16, %c0_17, %c0_18], %32 {strides = array<i32>} : memref<1x4x8x128xf32, #tpu.memory_space<vmem>>, vector<1x1x8x128xf32>,
    %c0_19 = arith.constant 0 : index
    %c1 = arith.constant 1 : index
    %c0_20 = arith.constant 0 : index
    %c0_21 = arith.constant 0 : index
    %33 = vector.load %arg4[%c0_19, %c1, %c0_20, %c0_21] : memref<1x4x8x128xf32, #tpu.memory_space<vmem>>, vector<1x1x8x128xf32>
    %34 = vector.shape_cast %33 : vector<1x1x8x128xf32> to vector<8x128xf32>
    %35 = arith.mulf %24, %6 : vector<8x128xf32>
    %36 = vector.shape_cast %35 : vector<8x128xf32> to vector<1x8x128xf32>
    %cst_22 = arith.constant dense<0.000000e+00> : vector<8x128xf32>
    %37 = vector.multi_reduction <add>, %36, %cst_22 [0] : vector<1x8x128xf32> to vector<8x128xf32>
    %38 = arith.addf %34, %37 : vector<8x128xf32>
    %c0_23 = arith.constant 0 : index
    %c1_24 = arith.constant 1 : index
    %c0_25 = arith.constant 0 : index
    %c0_26 = arith.constant 0 : index
    %39 = vector.load %arg4[%c0_23, %c1_24, %c0_25, %c0_26] : memref<1x4x8x128xf32, #tpu.memory_space<vmem>>, vector<1x1x8x128xf32>
    %40 = vector.shape_cast %39 : vector<1x1x8x128xf32> to vector<8x128xf32>
    %41 = vector.shape_cast %38 : vector<8x128xf32> to vector<1x1x8x128xf32>
    tpu.vector_store %arg4[%c0_23, %c1_24, %c0_25, %c0_26], %41 {strides = array<i32>} : memref<1x4x8x128xf32, #tpu.memory_space<vmem>>, vector<1x1x8x128xf32>,
    %c0_27 = arith.constant 0 : index
    %c2 = arith.constant 2 : index
    %c0_28 = arith.constant 0 : index
    %c0_29 = arith.constant 0 : index
    %42 = vector.load %arg4[%c0_27, %c2, %c0_28, %c0_29] : memref<1x4x8x128xf32, #tpu.memory_space<vmem>>, vector<1x1x8x128xf32>
    %43 = vector.shape_cast %42 : vector<1x1x8x128xf32> to vector<8x128xf32>
    %44 = vector.shape_cast %24 : vector<8x128xf32> to vector<1x8x128xf32>
    %cst_30 = arith.constant dense<0.000000e+00> : vector<8x128xf32>
    %45 = vector.multi_reduction <add>, %44, %cst_30 [0] : vector<1x8x128xf32> to vector<8x128xf32>
    %46 = arith.addf %43, %45 : vector<8x128xf32>
    %c0_31 = arith.constant 0 : index
    %c2_32 = arith.constant 2 : index
    %c0_33 = arith.constant 0 : index
    %c0_34 = arith.constant 0 : index
    %47 = vector.load %arg4[%c0_31, %c2_32, %c0_33, %c0_34] : memref<1x4x8x128xf32, #tpu.memory_space<vmem>>, vector<1x1x8x128xf32>
    %48 = vector.shape_cast %47 : vector<1x1x8x128xf32> to vector<8x128xf32>
    %49 = vector.shape_cast %46 : vector<8x128xf32> to vector<1x1x8x128xf32>
    tpu.vector_store %arg4[%c0_31, %c2_32, %c0_33, %c0_34], %49 {strides = array<i32>} : memref<1x4x8x128xf32, #tpu.memory_space<vmem>>, vector<1x1x8x128xf32>,
    %c0_35 = arith.constant 0 : index
    %c3 = arith.constant 3 : index
    %c0_36 = arith.constant 0 : index
    %c0_37 = arith.constant 0 : index
    %50 = vector.load %arg4[%c0_35, %c3, %c0_36, %c0_37] : memref<1x4x8x128xf32, #tpu.memory_space<vmem>>, vector<1x1x8x128xf32>
    %51 = vector.shape_cast %50 : vector<1x1x8x128xf32> to vector<8x128xf32>
    %52 = vector.shape_cast %6 : vector<8x128xf32> to vector<1x8x128xf32>
    %cst_38 = arith.constant dense<0.000000e+00> : vector<8x128xf32>
    %53 = vector.multi_reduction <add>, %52, %cst_38 [0] : vector<1x8x128xf32> to vector<8x128xf32>
    %54 = arith.addf %51, %53 : vector<8x128xf32>
    %c0_39 = arith.constant 0 : index
    %c3_40 = arith.constant 3 : index
    %c0_41 = arith.constant 0 : index
    %c0_42 = arith.constant 0 : index
    %55 = vector.load %arg4[%c0_39, %c3_40, %c0_41, %c0_42] : memref<1x4x8x128xf32, #tpu.memory_space<vmem>>, vector<1x1x8x128xf32>
    %56 = vector.shape_cast %55 : vector<1x1x8x128xf32> to vector<8x128xf32>
    %57 = vector.shape_cast %54 : vector<8x128xf32> to vector<1x1x8x128xf32>
    tpu.vector_store %arg4[%c0_39, %c3_40, %c0_41, %c0_42], %57 {strides = array<i32>} : memref<1x4x8x128xf32, #tpu.memory_space<vmem>>, vector<1x1x8x128xf32>,
    return
  }
  func.func @transform_0(%arg0: i32, %arg1: i32) -> (i32, i32, i32) {
    %c0_i32 = arith.constant 0 : i32
    %c0_i32_0 = arith.constant 0 : i32
    return %arg0, %arg1, %c0_i32 : i32, i32, i32
  }
  func.func @transform_1(%arg0: i32, %arg1: i32) -> (i32, i32, i32) {
    %c0_i32 = arith.constant 0 : i32
    %c0_i32_0 = arith.constant 0 : i32
    return %arg0, %arg1, %c0_i32 : i32, i32, i32
  }
  func.func @transform_2(%arg0: i32, %arg1: i32) -> (i32, i32, i32, i32) {
    %c0_i32 = arith.constant 0 : i32
    %c0_i32_0 = arith.constant 0 : i32
    %c0_i32_1 = arith.constant 0 : i32
    %c0_i32_2 = arith.constant 0 : i32
    return %arg0, %c0_i32, %c0_i32_0, %c0_i32_1 : i32, i32, i32, i32
  }
}

</mosaic_0001>

<bundles_post_ra>
// kernel: tpu_custom_call.1
= control target key start
LH: loop header
LB: loop body
LE: loop exit
PB: predicated region body
PF: predicated region fallthrough
CT: control target
= control target key end

     0   :  { %7 = vsyncpa [#allocation3], 0  ;;  %s885_s0 = inlined_call_operand.hbm [shape: f32[2,8,128], index: 0, kind: input, shape index: {}]   ;;  %s886_s1 = inlined_call_operand.hbm [shape: f32[2,8,128], index: 1, kind: input, shape index: {}]   ;;  %s887_s2 = inlined_call_operand.hbm [shape: f32[2,4,8,128], index: 2, kind: output, shape index: {}]  }
   0x1   :  { %9 = vsyncpa [#allocation3 + $0x1], 0 }
   0x2   :  { %10 = vsyncpa [#allocation6], 0 }
   0x3   :  { %12 = vsyncpa [#allocation6 + $0x1], 0 }
   0x4   :  { %13 = vsyncpa [#allocation4], 0 }
   0x5   :  { %15 = vsyncpa [#allocation4 + $0x1], 0  ;;  %s655_s9 = smov 0   ;;  %s657_s10 = smov 0  }
   0x6   :  { %s659_s11 = smov 0   ;;  %s661_s12 = smov 0  }
   0x7   :  { %s663_s13 = smov 0   ;;  %s665_s14 = smov 0  }
   0x8 LB: > { %s387_s15 = sadd.s32 4294967295, %s633_s14   ;;  %s388_s16 = sadd.s32 4294967294, %s633_s14   ;;  %s633_s14 = sphi %s665_s14, %s21_s14   ;;  %s629_s13 = sphi %s663_s13, %s907_s13   ;;  %s625_s12 = sphi %s661_s12, %s906_s12   ;;  %s621_s11 = sphi %s659_s11, %s905_s11   ;;  %s617_s10 = sphi %s657_s10, %s904_s10   ;;  %s613_s9 = sphi %s655_s9, %s903_s9  }
   0x9   : > { %s33_s17 = sadd.s32 1, %s629_s13  ;;  %s42_s18 = sadd.s32 1, %s621_s11 }
   0xa   : > { %p35_p0 = scmp.ge.s32.totalorder %s33_s17, 2  ;;  %p49_p1 = scmp.ne.s32.totalorder %s621_s11, %s617_s10 }
   0xb   : > { %p50_p2 = scmp.eq.s32.totalorder %s633_s14, 0  ;;  %p55_p3 = scmp.ne.s32.totalorder %s617_s10, %s613_s9 }
   0xc   : > { %s909_s17 = smov (%p35_p0, %s33_s17), 0  ;;  %p56_p5 = scmp.eq.s32.totalorder %s387_s15, 0 }
   0xd   : > { %p696_p4 = por %p50_p2, %p49_p1  ;;  %s37_s20 = ssub.s32 %s629_s13, %s909_s17 }
   0xe   : > { %p107_p6 = scmp.eq.s32.totalorder %s387_s15, 1  ;;  %p40_p7 = scmp.eq.s32.totalorder %s37_s20, 0 }
   0xf   : > { %p702_p8 = por %p56_p5, %p55_p3  ;;  %p113_p10 = scmp.eq.s32.totalorder %s388_s16, 1 }
  0x10   : > { %p706_p9 = por %p107_p6, %p49_p1  ;;  %p428_p13 = scmp.lt.s32.totalorder %s633_s14, 2 }
  0x11   : > { %s891_s21 = scalar_select %p702_p8, 1, 0 }
  0x12   : > { %s892_s22 = scalar_select %p706_p9, 1, 0 }
  0x13   : > { %s711_s23 = scalar_select %p40_p7, %s621_s11, %s42_s18  }
  0x14   : > { %p713_p11 = por %p113_p10, %p55_p3  ;;  %s720_s25 = sand.u32 1, %s621_s11  }
  0x15   : > { %s391_s26 = sshll.u32 %s720_s25, 3  ;;  %s392_s27 = sshll.u32 %s629_s13, 7 }
  0x16   : > { %s893_s24 = scalar_select %p713_p11, 1, 0 }
  0x17   : > { %s729_s30 = scalar_lea.hbm %s885_s0, %s392_s27  ;;  %s137_s3 = scalar_lea.vmem [#allocation2], %s391_s26 }
  0x18   : > { %s145_s4 = sshll.u32 %s137_s3, 4  ;;  %p737_p0 = pnand %p428_p13, %p696_p4  ;;  %s733_s4 = int_to_ptr.vmem [resolvable:$true] %s145_s4 }
  0x19   : > { %s134_s6 = scalar_lea.sflag [#allocation3], %s720_s25  ;;  %s487_s7 = scalar_lea.hbm %s729_s30, 128 }
  0x1a   : > { %p488_p3 = scmp.ne.s32.totalorder %s729_s30, %s487_s7  ;;  %p489_p5 = pneg %p737_p0 }
  0x1b   : > { %s492_s16 = scalar_lea.hbm %s885_s0, 256  ;;  %p493_p4 = scmp.lt.u32.totalorder %s729_s30, %s885_s0 }
  0x1c   : > { %p490_p6 = pnand %p489_p5, %p488_p3  ;;  %p494_p10 = scmp.lt.u32.totalorder %s492_s16, %s487_s7 }
  0x1d   : > { %p496_p12 = scmp.lt.u32.totalorder %s487_s7, %s729_s30 }
  0x1e   : > { %p491_p7 = pneg %p490_p6  ;;  %p495_p13 = por %p494_p10, %p493_p4 }
  0x20   : > { %p497_p1 = por %p496_p12, %p495_p13 }
  0x22   : > { %p498_p2 = pnand %p497_p1, %p491_p7 }
  0x24   : > { %501 = shalt.err (!%p498_p2)
}
  0x25   : > { %s502_s20 = scalar_lea.vmem %s733_s4, 128  ;;  %s635_s28 = smov [#allocation2]  }
  0x26   : > { %p503_p3 = scmp.ne.s32.totalorder %s733_s4, %s502_s20  ;;  %s507_s29 = sshll.u32 %s635_s28, 4  ;;  %s508_s29 = int_to_ptr.vmem [resolvable:$false] %s507_s29 }
  0x27   : > { %s509_s3 = scalar_lea.vmem %s508_s29, 256  ;;  %p510_p9 = scmp.lt.s32.totalorder %s733_s4, %s508_s29 }
  0x28   : > { %p505_p6 = pnand %p503_p3, %p489_p5  ;;  %p511_p4 = scmp.lt.s32.totalorder %s509_s3, %s502_s20 }
  0x2a   : > { %p506_p11 = pneg %p505_p6  ;;  %p512_p10 = por %p511_p4, %p510_p9 }
  0x2c   : > { %p513_p12 = pnand %p512_p10, %p506_p11 }
  0x2e   : > { %516 = shalt.err (!%p513_p12)
}
  0x2f   : > { %420 = dma.hbm_to_vmem [thread:$0]  (!%p737_p0), %s729_s30, 128, %s733_s4, %s134_s6  }
  0x30   : > { %p895_p1 = scmp.lt.s32.totalorder %s633_s14, 3  ;;  %p896_p2 = scmp.ge.s32.totalorder %s633_s14, 1 }
  0x31   : > { %s782_s16 = scalar_lea.hbm %s886_s1, %s392_s27  ;;  %s156_s18 = scalar_lea.vmem [#allocation5], %s391_s26 }
  0x32   : > { %p773_p7 = pnand %p896_p2, %p895_p1  ;;  %s164_s19 = sshll.u32 %s156_s18, 4  ;;  %s165_s19 = int_to_ptr.vmem [resolvable:$true] %s164_s19 }
  0x33   : > { %s153_s30 = scalar_lea.sflag [#allocation6], %s720_s25  ;;  %s517_s4 = scalar_lea.hbm %s782_s16, 128 }
  0x34   : > { %s897_s7 = scalar_select %p773_p7, 1, 0 }
  0x35   : > { %p518_p9 = scmp.ne.s32.totalorder %s782_s16, %s517_s4  ;;  %s522_s27 = scalar_lea.hbm %s886_s1, 256 }
  0x36   : > { %p523_p3 = scmp.lt.u32.totalorder %s782_s16, %s886_s1  ;;  %p524_p6 = scmp.lt.u32.totalorder %s522_s27, %s517_s4 }
  0x37   : > { %p520_p11 = pnand %p518_p9, %p489_p5  ;;  %p526_p10 = scmp.lt.u32.totalorder %s517_s4, %s782_s16 }
  0x38   : > { %p525_p4 = por %p524_p6, %p523_p3 }
  0x39   : > { %p521_p13 = pneg %p520_p11 }
  0x3a   : > { %p527_p12 = por %p526_p10, %p525_p4 }
  0x3c   : > { %p528_p1 = pnand %p527_p12, %p521_p13 }
  0x3e   : > { %531 = shalt.err (!%p528_p1)
}
  0x3f   : > { %s532_s25 = scalar_lea.vmem %s165_s19, 128  ;;  %s636_s26 = smov [#allocation5]  }
  0x40   : > { %p533_p2 = scmp.ne.s32.totalorder %s165_s19, %s532_s25  ;;  %s537_s3 = sshll.u32 %s636_s26, 4  ;;  %s538_s3 = int_to_ptr.vmem [resolvable:$false] %s537_s3 }
  0x41   : > { %s539_s8 = scalar_lea.vmem %s538_s3, 256  ;;  %p540_p8 = scmp.lt.s32.totalorder %s165_s19, %s538_s3 }
  0x42   : > { %p535_p9 = pnand %p533_p2, %p489_p5  ;;  %p541_p7 = scmp.lt.s32.totalorder %s539_s8, %s532_s25 }
  0x44   : > { %p536_p11 = pneg %p535_p9  ;;  %p542_p3 = por %p541_p7, %p540_p8 }
  0x46   : > { %p543_p6 = pnand %p542_p3, %p536_p11 }
  0x48   : > { %546 = shalt.err (!%p543_p6)
}
  0x49   : > { %423 = dma.hbm_to_vmem [thread:$0]  (!%p737_p0), %s782_s16, 128, %s165_s19, %s153_s30  }
  0x4a   : > { %p898_p13 = scmp.ne.s32.totalorder %s897_s7, 0 }
  0x4b   : > { %s809_s15 = sand.u32 (!%p898_p13), 1, %s617_s10   ;;  %p899_p5 = scmp.ne.s32.totalorder (!%p898_p13), %s891_s21, 0 }
  0x4c   : > { %173 = sbr.rel (%p898_p13) target bundleno = 138 (0x8a), region = 28  ;;  %s396_s18 = sshll.u32 (!%p898_p13), %s809_s15, 3 }
  0x4d   : > { %s176_s4 = scalar_lea.sflag (!%p898_p13), [#allocation3], %s809_s15  ;;  %s179_s6 = scalar_lea.vmem (!%p898_p13), [#allocation2], %s396_s18 }
  0x53   : > { %600 = dma.done.wait (%p899_p5), %s176_s4, 128  }
  0x54   : > { %602 = vsyncadd (%p899_p5), %s176_s4, 4294967168  ;;  %s185_s5 = scalar_lea.sflag [#allocation6], %s809_s15  ;;  %s188_s16 = scalar_lea.vmem [#allocation5], %s396_s18 }
  0x55   : > { %604 = dma.done.wait (%p899_p5), %s185_s5, 128  }
  0x56   : > { %606 = vsyncadd (%p899_p5), %s185_s5, 4294967168  ;;  %s398_s7 = sshll.u32 %s809_s15, 5  ;;  %v222_v0 = vld [vmem:[%s179_s6] sm:$0xff]  ;;  %v223_v1 = vld [vmem:[%s188_s16] sm:$0xff]  ;;  %s410_s21 = sshll.u32 %s625_s12, 9 }
  0x57   : > { %v224_v2 = vand.u32 2147483647, %v222_v0  ;;  %s823_s19 = scalar_lea.vmem [#allocation7], %s398_s7  ;;  %v228_v9 = vmax.f32 %v222_v0, 0.0  ;;  %v229_v10 = vmul.f32 %v223_v1, %v222_v0  ;;  %vm244_vm1 = vcmp.ge.f32.partialorder %v222_v0, 0.0  ;;  %s831_s28 = scalar_lea.hbm %s887_s2, %s410_s21 }
  0x58   : > { %404 = vst [vmem:[%s823_s19 + $0x18] sm:$0xff] %v223_v1  ;;  %s281_s30 = sshll.u32 %s823_s19, 4  ;;  %s268_s29 = scalar_lea.sflag [#allocation4], %s809_s15  ;;  %s833_s30 = int_to_ptr.vmem [resolvable:$true] %s281_s30 }
  0x59   : > { %v225_v3 = vsub.f32 0.0, %v224_v2  ;;  %v230_v14 = vsub.f32 %v228_v9, %v229_v10  ;;  %s547_s25 = scalar_lea.vmem %s833_s30, 512  ;;  %p900_p0 = scmp.ne.s32.totalorder %s892_s22, 0 }
  0x5a   : > { %p548_p8 = scmp.ne.s32.totalorder %s833_s30, %s547_s25  ;;  %s637_s12 = smov [#allocation7]  }
  0x5b   : > { %v226_v4 = vmul.f32 1.442695, %v225_v3  ;;  %s551_s26 = sshll.u32 %s637_s12, 4  ;;  %s552_s26 = int_to_ptr.vmem [resolvable:$false] %s551_s26 }
  0x5c   : > { %p549_p7 = pnand %p548_p8, %p900_p0  ;;  %s553_s3 = scalar_lea.vmem %s552_s26, 1024 }
  0x5d   : > { %481 = vpow2.f32 %v226_v4  ;;  %p554_p10 = scmp.lt.s32.totalorder %s833_s30, %s552_s26  ;;  %p555_p12 = scmp.lt.s32.totalorder %s553_s3, %s547_s25 }
  0x5e   : > { %p550_p4 = pneg %p549_p7 }
  0x5f   : > { %p556_p1 = por %p555_p12, %p554_p10 }
  0x61   : > { %p557_p2 = pnand %p556_p1, %p550_p4 }
  0x67   : > { %v482_v5 = vpop.eup %481 }
  0x68   : > { %v231_v6 = vadd.f32 1.0, %v482_v5  ;;  %v234_v7 = vmul.f32 -0.5, %v482_v5  ;;  %v237_v11 = vand.u32 2147483647, %v482_v5 }
  0x6a   : > { %483 = vlog2.f32 %v231_v6  ;;  %v235_v8 = vadd.f32 1.0, %v234_v7  ;;  %vm238_vm0 = vcmp.lt.f32.partialorder %v237_v11, 0.0004427343 }
  0x6b   : > { %485 = vrcp.f32 %v231_v6 }
  0x6c   : > { %v236_v12 = vmul.f32 %v482_v5, %v235_v8 }
  0x74   : > { %v484_v13 = vpop.eup %483 }
  0x75   : > { %v486_v15 = vpop.eup %485  ;;  %v233_v16 = vmul.f32 0.6931472, %v484_v13 }
  0x76   : > { %v245_v17 = vmul.f32 %v486_v15, %v482_v5 }
  0x77   : > { %v239_v18 = vsel %vm238_vm0, %v236_v12, %v233_v16 }
  0x78   : > { %v240_v19 = vadd.f32 %v239_v18, %v230_v14  ;;  %v246_v20 = vsel %vm244_vm1, %v486_v15, %v245_v17 }
  0x79   : > { %v253_v21 = vmul.f32 %v246_v20, %v223_v1  ;;  %402 = vst [vmem:[%s823_s19 + $0x10] sm:$0xff] %v246_v20 }
  0x7a   : > { %250 = vst [vmem:[%s823_s19] sm:$0xff] %v240_v19 }
  0x7b   : > { %400 = vst [vmem:[%s823_s19 + $0x8] sm:$0xff] %v253_v21 }
  0x7c   : > { %560 = shalt.err (!%p557_p2)
}
  0x7d   : > { %s561_s8 = scalar_lea.hbm %s831_s28, 512  ;;  %s565_s6 = scalar_lea.hbm %s887_s2, 1024 }
  0x7e   : > { %p562_p9 = scmp.ne.s32.totalorder %s831_s28, %s561_s8  ;;  %p566_p6 = scmp.lt.u32.totalorder %s831_s28, %s887_s2 }
  0x7f   : > { %p567_p13 = scmp.lt.u32.totalorder %s565_s6, %s561_s8  ;;  %p569_p8 = scmp.lt.u32.totalorder %s561_s8, %s831_s28 }
  0x80   : > { %p563_p11 = pnand %p562_p9, %p900_p0 }
  0x81   : > { %p568_p5 = por %p567_p13, %p566_p6 }
  0x82   : > { %p564_p3 = pneg %p563_p11 }
  0x83   : > { %p570_p7 = por %p569_p8, %p568_p5 }
  0x85   : > { %p571_p4 = pnand %p570_p7, %p564_p3 }
  0x87   : > { %574 = shalt.err (!%p571_p4)
}
  0x88   : > { %s638_s7 = smov 128   ;;  %s639_s19 = smov 8  }
  0x89   : > { %415 = dma.vmem_to_hbm [thread:$0]  (%p900_p0), %s833_s30, 512, %s831_s28, %s268_s29, %s638_s7, %s638_s7, %s639_s19  }
  0x8a PF: > { %s296_s21 = sand.u32 1, %s613_s9   ;;  %p901_p10 = scmp.ne.s32.totalorder %s893_s24, 0 }
  0x8b   : > { %p902_p12 = scmp.ge.s32.totalorder %s633_s14, 2  ;;  %s297_s20 = scalar_lea.sflag [#allocation4], %s296_s21 }
  0x8d   : > { %p425_p1 = pnand %p902_p12, %p901_p10 }
  0x8f   : > { %608 = dma.done.wait (!%p425_p1), %s297_s20, 512  }
  0x90   : > { %610 = vsyncadd (!%p425_p1), %s297_s20, 4294966784  ;;  %s21_s14 = sadd.s32 1, %s633_s14   ;;  %s903_s9 = smov %s617_s10 }
  0x91   : > { %p18_p2 = scmp.ge.s32.totalorder %s21_s14, 4   ;;  %s904_s10 = smov %s621_s11 }
  0x92   : > { %s905_s11 = smov %s711_s23  ;;  %s906_s12 = smov %s629_s13 }
  0x93   : > { %s907_s13 = smov %s909_s17  ;;  %20 = sbr.rel (!%p18_p2) target bundleno = 8 (0x8), region = 93 }
  0x9a   :  { %302 = vsyncpa [#allocation3], 1 }
  0x9b   :  { %304 = vsyncpa [#allocation3 + $0x1], 1 }
  0x9c   :  { %305 = vsyncpa [#allocation6], 1 }
  0x9d   :  { %307 = vsyncpa [#allocation6 + $0x1], 1 }
  0x9e   :  { %308 = vsyncpa [#allocation4], 1 }
  0x9f   :  { %310 = vsyncpa [#allocation4 + $0x1], 1 }

</bundles_post_ra>
